<compile_context>
chip_gen: v7x
topology: tpu7x:2x2x1
jax: 0.10.0
libtpu: 0.0.40
codegen_flags: <defaults>
</compile_context>

<pallas_src>
import math

import jax
import jax.numpy as jnp
from jax import lax
from jax.experimental import pallas as pl
from jax.experimental.pallas import tpu as pltpu

LANE = 128
MAX_TILE_ROWS = 2048            # 1 MiB f32 block per stream -> near HBM roofline
MIN_TILE_ROWS = 32              # keeps sublane alignment for f32 / bf16 / int8
VMEM_BUDGET = 12 * 1024 * 1024  # double-buffered input footprint budget (headroom
                                # under v5e's 16 MiB scoped default, fine on v6e/v7x)
NCORES = 2                      # leading "parallel" axis width (v7x has 2 TCs)


# ---------------- wrapper glue: free reshape to a lane-dense slab ----------------

def _row_align(dtype):
    # sublane packing: f32 -> 8 rows, bf16 -> 16, int8/fp8 -> 32
    return 8 * max(1, 4 // jnp.dtype(dtype).itemsize)


def _to_slab(x, pad_value):
    """Flatten to (rows, 128) in the ORIGINAL dtype.  When the flat size is already a
    multiple of the aligned chunk this is a pure-metadata reshape (no HBM copy)."""
    flat = jnp.reshape(x, (-1,))
    n = flat.shape[0]
    chunk = _row_align(flat.dtype) * LANE
    if n % chunk == 0:
        return jnp.reshape(flat, (n // LANE, LANE))
    # TODO(synk): rare misaligned-size fallback materializes one padded copy; typical
    # NCHW image / likelihood tensors take the free-reshape path above.
    padded = ((n + chunk - 1) // chunk) * chunk
    flat = jnp.pad(flat, (0, padded - n), constant_values=pad_value)
    return jnp.reshape(flat, (padded // LANE, LANE))


# ------- fused reduction: sum((a-b)^2)  and  sum over streams of sum(log) -------

def _fused_loss_sums(x_hat, target, likelihoods):
    xh = _to_slab(x_hat, 0)
    tg = _to_slab(target, 0)
    liks = [_to_slab(l, 1) for l in likelihoods]   # pad value 1 -> log(1) == 0

    streams = [xh, tg] + liks
    n_lik = len(liks)
    n_streams = len(streams)
    rows = [s.shape[0] for s in streams]

    # largest tile whose double-buffered footprint fits the VMEM budget
    tile = MAX_TILE_ROWS
    while tile > MIN_TILE_ROWS:
        footprint = sum(2 * min(tile, r) * LANE * s.dtype.itemsize
                        for r, s in zip(rows, streams))
        if footprint <= VMEM_BUDGET:
            break
        tile //= 2

    block_rows = [min(tile, r) for r in rows]                 # multiples of 8
    nblocks = [pl.cdiv(r, b) for r, b in zip(rows, block_rows)]
    halves = [pl.cdiv(nb, NCORES) for nb in nblocks]          # per-core share of blocks
    n_inner = max(halves)

    def make_idx_map(half, nblk):
        def idx_map(c, i):
            # clamp so "extra" steps revisit the last block (contribution is masked;
            # the unchanged block index means Pallas skips the re-DMA)
            return (jnp.minimum(c * half + i, nblk - 1), 0)
        return idx_map

    in_specs = [pl.BlockSpec((b, LANE), make_idx_map(h, nb))
                for b, h, nb in zip(block_rows, halves, nblocks)]
    out_specs = (pl.BlockSpec((1, 1, 1), lambda c, i: (c, 0, 0)),
                 pl.BlockSpec((1, 1, 1), lambda c, i: (c, 0, 0)))
    out_shape = (jax.ShapeDtypeStruct((NCORES, 1, 1), jnp.float32),
                 jax.ShapeDtypeStruct((NCORES, 1, 1), jnp.float32))

    def kernel(*refs):
        stream_refs = refs[:n_streams]
        sq_out, log_out = refs[n_streams], refs[n_streams + 1]
        sq_acc, log_acc = refs[n_streams + 2], refs[n_streams + 3]

        c = pl.program_id(0)
        i = pl.program_id(1)

        @pl.when(i == 0)
        def _init():
            sq_acc[...] = jnp.zeros_like(sq_acc)
            log_acc[...] = jnp.zeros_like(log_acc)

        def row_mask(s, shape):
            # rows of this block view holding real data for grid step (c, i)
            local = lax.broadcasted_iota(jnp.int32, shape, 0)
            blk = c * halves[s] + i                          # un-clamped block id
            return (blk * block_rows[s] + local) < rows[s]

        # --- squared difference between x_hat (stream 0) and target (stream 1) ---
        @pl.when(i < halves[0])            # skip compute on clamped revisits
        def _sq():
            d = (stream_refs[0][...].astype(jnp.float32)
                 - stream_refs[1][...].astype(jnp.float32))
            d = jnp.where(row_mask(0, d.shape), d, 0.0)      # mask BEFORE squaring
            sq_acc[...] += jnp.sum(
                (d * d).reshape(block_rows[0] // 8, 8, LANE), axis=0)

        # --- sum(log(likelihoods)) accumulated across all likelihood streams ---
        for k in range(n_lik):
            s = 2 + k

            @pl.when(i < halves[s])        # skip compute on clamped revisits
            def _acc(s=s):
                x = stream_refs[s][...].astype(jnp.float32)
                x = jnp.where(row_mask(s, x.shape), x, 1.0)  # log(1) == 0, mask pre-log
                log_acc[...] += jnp.sum(
                    jnp.log(x).reshape(block_rows[s] // 8, 8, LANE), axis=0)

        @pl.when(i == n_inner - 1)
        def _finalize():
            sq_out[...] = jnp.sum(sq_acc[...]).reshape(1, 1, 1)
            log_out[...] = jnp.sum(log_acc[...]).reshape(1, 1, 1)

    sq_part, log_part = pl.pallas_call(
        kernel,
        out_shape=out_shape,
        grid=(NCORES, n_inner),
        in_specs=in_specs,
        out_specs=out_specs,
        scratch_shapes=[pltpu.VMEM((8, LANE), jnp.float32),   # sq accumulator
                        pltpu.VMEM((8, LANE), jnp.float32)],  # log accumulator
        compiler_params=pltpu.CompilerParams(
            dimension_semantics=("parallel", "arbitrary")),
    )(*streams)

    return jnp.sum(sq_part), jnp.sum(log_part)


# ---------------- loss (matches RateDistortionLoss.forward) ----------------

def rate_distortion_loss(output, target, lmbda):
    N, _, H, W = target.shape
    num_pixels = N * H * W

    liks = list(output['likelihoods'].values())
    sq_sum, log_sum = _fused_loss_sums(output['x_hat'], target, liks)

    bpp_loss = log_sum / (-math.log(2) * num_pixels)
    # nn.MSELoss default reduction='mean' averages over ALL elements of target
    mse_loss = sq_sum / float(target.size) * (255.0 ** 2)
    loss = lmbda * mse_loss + bpp_loss
    return {'bpp_loss': bpp_loss, 'mse_loss': mse_loss, 'loss': loss}


# ---------------- demo / self-check ----------------

if __name__ == "__main__":
    key = jax.random.PRNGKey(0)
    k1, k2, k3, k4 = jax.random.split(key, 4)

    N, C, H, W = 2, 4, 16, 16
    target = jax.random.uniform(k1, (N, C, H, W), jnp.float32)
    x_hat = target + 0.05 * jax.random.normal(k2, (N, C, H, W), jnp.float32)

    # two "likelihoods" tensors (e.g. y and z of a compression model), in (0, 1]
    lik_y = jax.random.uniform(k3, (N, 8, 8, 8), jnp.float32, minval=1e-3, maxval=1.0)
    lik_z = jax.random.uniform(k4, (N, 8, 4, 4), jnp.float32, minval=1e-3, maxval=1.0)

    output = {'x_hat': x_hat, 'likelihoods': {'y': lik_y, 'z': lik_z}}
    lmbda = 0.01

    loss_fn = jax.jit(rate_distortion_loss)
    res = loss_fn(output, target, lmbda)
    res = jax.tree_util.tree_map(jax.block_until_ready, res)

    # reference check in plain JAX
    num_pixels = N * H * W
    bpp_ref = (jnp.sum(jnp.log(lik_y)) + jnp.sum(jnp.log(lik_z))) / (-math.log(2) * num_pixels)
    mse_ref = jnp.mean((x_hat - target) ** 2) * 255.0 ** 2
    loss_ref = lmbda * mse_ref + bpp_ref

    assert jnp.allclose(res['bpp_loss'], bpp_ref, rtol=1e-5, atol=1e-5)
    assert jnp.allclose(res['mse_loss'], mse_ref, rtol=1e-5, atol=1e-4)
    assert jnp.allclose(res['loss'], loss_ref, rtol=1e-5, atol=1e-4)

    print("KERNEL_OK")
</pallas_src>

<mosaic_0001>
module attributes {stable_mosaic.version = 11 : i64} {
  func.func @kernel(%arg0: i32, %arg1: i32, %arg2: memref<16x128xf32, #tpu.memory_space<vmem>>, %arg3: memref<16x128xf32, #tpu.memory_space<vmem>>, %arg4: memref<8x128xf32, #tpu.memory_space<vmem>>, %arg5: memref<8x128xf32, #tpu.memory_space<vmem>>, %arg6: memref<1x1x1xf32, #tpu.memory_space<vmem>>, %arg7: memref<1x1x1xf32, #tpu.memory_space<vmem>>, %arg8: memref<8x128xf32, #tpu.memory_space<vmem>>, %arg9: memref<8x128xf32, #tpu.memory_space<vmem>>) attributes {dimension_semantics = [#tpu.dimension_semantics<parallel>, #tpu.dimension_semantics<arbitrary>], iteration_bounds = array<i64: 2, 1>, scalar_prefetch = 0 : i64, scratch_operands = 2 : i64, tpu.core_type = #tpu.core_type<tc>, window_params = [{transform_indices = @transform_0, window_bounds = array<i64: 16, 128>}, {transform_indices = @transform_1, window_bounds = array<i64: 16, 128>}, {transform_indices = @transform_2, window_bounds = array<i64: 8, 128>}, {transform_indices = @transform_3, window_bounds = array<i64: 8, 128>}, {transform_indices = @transform_4, window_bounds = array<i64: 1, 1, 1>}, {transform_indices = @transform_5, window_bounds = array<i64: 1, 1, 1>}]} {
    %c0_i32 = arith.constant 0 : i32
    %0 = arith.cmpi eq, %arg1, %c0_i32 : i32
    %1 = arith.extui %0 : i1 to i32
    %c0_i32_0 = arith.constant 0 : i32
    %2 = arith.cmpi ne, %1, %c0_i32_0 : i32
    scf.if %2 {
      %cst = arith.constant 0.000000e+00 : f32
      %15 = vector.broadcast %cst : f32 to vector<8x128xf32>
      %c0 = arith.constant 0 : index
      %c0_8 = arith.constant 0 : index
      %16 = vector.load %arg8[%c0, %c0_8] : memref<8x128xf32, #tpu.memory_space<vmem>>, vector<8x128xf32>
      tpu.vector_store %arg8[%c0, %c0_8], %15 {strides = array<i32>} : memref<8x128xf32, #tpu.memory_space<vmem>>, vector<8x128xf32>,
      %cst_9 = arith.constant 0.000000e+00 : f32
      %17 = vector.broadcast %cst_9 : f32 to vector<8x128xf32>
      %c0_10 = arith.constant 0 : index
      %c0_11 = arith.constant 0 : index
      %18 = vector.load %arg9[%c0_10, %c0_11] : memref<8x128xf32, #tpu.memory_space<vmem>>, vector<8x128xf32>
      tpu.vector_store %arg9[%c0_10, %c0_11], %17 {strides = array<i32>} : memref<8x128xf32, #tpu.memory_space<vmem>>, vector<8x128xf32>,
    } else {
    }
    %c1_i32 = arith.constant 1 : i32
    %3 = arith.cmpi slt, %arg1, %c1_i32 : i32
    %4 = arith.extui %3 : i1 to i32
    %c0_i32_1 = arith.constant 0 : i32
    %5 = arith.cmpi ne, %4, %c0_i32_1 : i32
    scf.if %5 {
      %c0 = arith.constant 0 : index
      %c0_8 = arith.constant 0 : index
      %15 = vector.load %arg2[%c0, %c0_8] : memref<16x128xf32, #tpu.memory_space<vmem>>, vector<16x128xf32>
      %c0_9 = arith.constant 0 : index
      %c0_10 = arith.constant 0 : index
      %16 = vector.load %arg3[%c0_9, %c0_10] : memref<16x128xf32, #tpu.memory_space<vmem>>, vector<16x128xf32>
      %17 = arith.subf %15, %16 : vector<16x128xf32>
      %18 = tpu.iota {dimensions = array<i32: 0>} : vector<16x128xi32>
      %c1_i32_11 = arith.constant 1 : i32
      %19 = arith.muli %arg0, %c1_i32_11 : i32
      %20 = arith.addi %19, %arg1 : i32
      %c16_i32 = arith.constant 16 : i32
      %21 = arith.muli %20, %c16_i32 : i32
      %22 = vector.broadcast %21 : i32 to vector<16x128xi32>
      %23 = arith.addi %22, %18 : vector<16x128xi32>
      %c16_i32_12 = arith.constant 16 : i32
      %24 = vector.broadcast %c16_i32_12 : i32 to vector<16x128xi32>
      %25 = arith.cmpi slt, %23, %24 : vector<16x128xi32>
      %cst = arith.constant 0.000000e+00 : f32
      %26 = vector.broadcast %cst : f32 to vector<16x128xf32>
      %27 = arith.select %25, %17, %26 : vector<16x128xi1>, vector<16x128xf32>
      %c0_13 = arith.constant 0 : index
      %c0_14 = arith.constant 0 : index
      %28 = vector.load %arg8[%c0_13, %c0_14] : memref<8x128xf32, #tpu.memory_space<vmem>>, vector<8x128xf32>
      %29 = arith.mulf %27, %27 : vector<16x128xf32>
      %30 = vector.shape_cast %29 : vector<16x128xf32> to vector<2x8x128xf32>
      %cst_15 = arith.constant dense<0.000000e+00> : vector<8x128xf32>
      %31 = vector.multi_reduction <add>, %30, %cst_15 [0] : vector<2x8x128xf32> to vector<8x128xf32>
      %32 = arith.addf %28, %31 : vector<8x128xf32>
      %c0_16 = arith.constant 0 : index
      %c0_17 = arith.constant 0 : index
      %33 = vector.load %arg8[%c0_16, %c0_17] : memref<8x128xf32, #tpu.memory_space<vmem>>, vector<8x128xf32>
      tpu.vector_store %arg8[%c0_16, %c0_17], %32 {strides = array<i32>} : memref<8x128xf32, #tpu.memory_space<vmem>>, vector<8x128xf32>,
    } else {
    }
    %c1_i32_2 = arith.constant 1 : i32
    %6 = arith.cmpi slt, %arg1, %c1_i32_2 : i32
    %7 = arith.extui %6 : i1 to i32
    %c0_i32_3 = arith.constant 0 : i32
    %8 = arith.cmpi ne, %7, %c0_i32_3 : i32
    scf.if %8 {
      %c0 = arith.constant 0 : index
      %c0_8 = arith.constant 0 : index
      %15 = vector.load %arg4[%c0, %c0_8] : memref<8x128xf32, #tpu.memory_space<vmem>>, vector<8x128xf32>
      %16 = tpu.iota {dimensions = array<i32: 0>} : vector<8x128xi32>
      %c1_i32_9 = arith.constant 1 : i32
      %17 = arith.muli %arg0, %c1_i32_9 : i32
      %18 = arith.addi %17, %arg1 : i32
      %c8_i32 = arith.constant 8 : i32
      %19 = arith.muli %18, %c8_i32 : i32
      %20 = vector.broadcast %19 : i32 to vector<8x128xi32>
      %21 = arith.addi %20, %16 : vector<8x128xi32>
      %c8_i32_10 = arith.constant 8 : i32
      %22 = vector.broadcast %c8_i32_10 : i32 to vector<8x128xi32>
      %23 = arith.cmpi slt, %21, %22 : vector<8x128xi32>
      %cst = arith.constant 1.000000e+00 : f32
      %24 = vector.broadcast %cst : f32 to vector<8x128xf32>
      %25 = arith.select %23, %15, %24 : vector<8x128xi1>, vector<8x128xf32>
      %c0_11 = arith.constant 0 : index
      %c0_12 = arith.constant 0 : index
      %26 = vector.load %arg9[%c0_11, %c0_12] : memref<8x128xf32, #tpu.memory_space<vmem>>, vector<8x128xf32>
      %27 = math.log %25 : vector<8x128xf32>
      %28 = vector.shape_cast %27 : vector<8x128xf32> to vector<1x8x128xf32>
      %cst_13 = arith.constant dense<0.000000e+00> : vector<8x128xf32>
      %29 = vector.multi_reduction <add>, %28, %cst_13 [0] : vector<1x8x128xf32> to vector<8x128xf32>
      %30 = arith.addf %26, %29 : vector<8x128xf32>
      %c0_14 = arith.constant 0 : index
      %c0_15 = arith.constant 0 : index
      %31 = vector.load %arg9[%c0_14, %c0_15] : memref<8x128xf32, #tpu.memory_space<vmem>>, vector<8x128xf32>
      tpu.vector_store %arg9[%c0_14, %c0_15], %30 {strides = array<i32>} : memref<8x128xf32, #tpu.memory_space<vmem>>, vector<8x128xf32>,
    } else {
    }
    %c1_i32_4 = arith.constant 1 : i32
    %9 = arith.cmpi slt, %arg1, %c1_i32_4 : i32
    %10 = arith.extui %9 : i1 to i32
    %c0_i32_5 = arith.constant 0 : i32
    %11 = arith.cmpi ne, %10, %c0_i32_5 : i32
    scf.if %11 {
      %c0 = arith.constant 0 : index
      %c0_8 = arith.constant 0 : index
      %15 = vector.load %arg5[%c0, %c0_8] : memref<8x128xf32, #tpu.memory_space<vmem>>, vector<8x128xf32>
      %16 = tpu.iota {dimensions = array<i32: 0>} : vector<8x128xi32>
      %c1_i32_9 = arith.constant 1 : i32
      %17 = arith.muli %arg0, %c1_i32_9 : i32
      %18 = arith.addi %17, %arg1 : i32
      %c8_i32 = arith.constant 8 : i32
      %19 = arith.muli %18, %c8_i32 : i32
      %20 = vector.broadcast %19 : i32 to vector<8x128xi32>
      %21 = arith.addi %20, %16 : vector<8x128xi32>
      %c8_i32_10 = arith.constant 8 : i32
      %22 = vector.broadcast %c8_i32_10 : i32 to vector<8x128xi32>
      %23 = arith.cmpi slt, %21, %22 : vector<8x128xi32>
      %cst = arith.constant 1.000000e+00 : f32
      %24 = vector.broadcast %cst : f32 to vector<8x128xf32>
      %25 = arith.select %23, %15, %24 : vector<8x128xi1>, vector<8x128xf32>
      %c0_11 = arith.constant 0 : index
      %c0_12 = arith.constant 0 : index
      %26 = vector.load %arg9[%c0_11, %c0_12] : memref<8x128xf32, #tpu.memory_space<vmem>>, vector<8x128xf32>
      %27 = math.log %25 : vector<8x128xf32>
      %28 = vector.shape_cast %27 : vector<8x128xf32> to vector<1x8x128xf32>
      %cst_13 = arith.constant dense<0.000000e+00> : vector<8x128xf32>
      %29 = vector.multi_reduction <add>, %28, %cst_13 [0] : vector<1x8x128xf32> to vector<8x128xf32>
      %30 = arith.addf %26, %29 : vector<8x128xf32>
      %c0_14 = arith.constant 0 : index
      %c0_15 = arith.constant 0 : index
      %31 = vector.load %arg9[%c0_14, %c0_15] : memref<8x128xf32, #tpu.memory_space<vmem>>, vector<8x128xf32>
      tpu.vector_store %arg9[%c0_14, %c0_15], %30 {strides = array<i32>} : memref<8x128xf32, #tpu.memory_space<vmem>>, vector<8x128xf32>,
    } else {
    }
    %c0_i32_6 = arith.constant 0 : i32
    %12 = arith.cmpi eq, %arg1, %c0_i32_6 : i32
    %13 = arith.extui %12 : i1 to i32
    %c0_i32_7 = arith.constant 0 : i32
    %14 = arith.cmpi ne, %13, %c0_i32_7 : i32
    scf.if %14 {
      %c0 = arith.constant 0 : index
      %c0_8 = arith.constant 0 : index
      %15 = vector.load %arg8[%c0, %c0_8] : memref<8x128xf32, #tpu.memory_space<vmem>>, vector<8x128xf32>
      %16 = vector.shape_cast %15 : vector<8x128xf32> to vector<1x8x128xf32>
      %cst = arith.constant dense<0.000000e+00> : vector<1xf32>
      %17 = vector.multi_reduction <add>, %16, %cst [1, 2] : vector<1x8x128xf32> to vector<1xf32>
      %18 = vector.shape_cast %17 : vector<1xf32> to vector<1x1x1xf32>
      %19 = vector.extract %18[0, 0, 0] : f32 from vector<1x1x1xf32>
      %20 = vector.broadcast %19 : f32 to vector<1x1x1xf32>
      %c0_9 = arith.constant 0 : index
      %c0_10 = arith.constant 0 : index
      %c0_11 = arith.constant 0 : index
      %21 = vector.load %arg6[%c0_9, %c0_10, %c0_11] : memref<1x1x1xf32, #tpu.memory_space<vmem>>, vector<1x1x1xf32>
      tpu.vector_store %arg6[%c0_9, %c0_10, %c0_11], %20 {strides = array<i32>} : memref<1x1x1xf32, #tpu.memory_space<vmem>>, vector<1x1x1xf32>,
      %c0_12 = arith.constant 0 : index
      %c0_13 = arith.constant 0 : index
      %22 = vector.load %arg9[%c0_12, %c0_13] : memref<8x128xf32, #tpu.memory_space<vmem>>, vector<8x128xf32>
      %23 = vector.shape_cast %22 : vector<8x128xf32> to vector<1x8x128xf32>
      %cst_14 = arith.constant dense<0.000000e+00> : vector<1xf32>
      %24 = vector.multi_reduction <add>, %23, %cst_14 [1, 2] : vector<1x8x128xf32> to vector<1xf32>
      %25 = vector.shape_cast %24 : vector<1xf32> to vector<1x1x1xf32>
      %26 = vector.extract %25[0, 0, 0] : f32 from vector<1x1x1xf32>
      %27 = vector.broadcast %26 : f32 to vector<1x1x1xf32>
      %c0_15 = arith.constant 0 : index
      %c0_16 = arith.constant 0 : index
      %c0_17 = arith.constant 0 : index
      %28 = vector.load %arg7[%c0_15, %c0_16, %c0_17] : memref<1x1x1xf32, #tpu.memory_space<vmem>>, vector<1x1x1xf32>
      tpu.vector_store %arg7[%c0_15, %c0_16, %c0_17], %27 {strides = array<i32>} : memref<1x1x1xf32, #tpu.memory_space<vmem>>, vector<1x1x1xf32>,
    } else {
    }
    return
  }
  func.func @transform_0(%arg0: i32, %arg1: i32) -> (i32, i32) {
    %c1_i32 = arith.constant 1 : i32
    %0 = arith.muli %arg0, %c1_i32 : i32
    %1 = arith.addi %0, %arg1 : i32
    %c0_i32 = arith.constant 0 : i32
    %2 = arith.minsi %1, %c0_i32 : i32
    %c0_i32_0 = arith.constant 0 : i32
    %c0_i32_1 = arith.constant 0 : i32
    return %2, %c0_i32_0 : i32, i32
  }
  func.func @transform_1(%arg0: i32, %arg1: i32) -> (i32, i32) {
    %c1_i32 = arith.constant 1 : i32
    %0 = arith.muli %arg0, %c1_i32 : i32
    %1 = arith.addi %0, %arg1 : i32
    %c0_i32 = arith.constant 0 : i32
    %2 = arith.minsi %1, %c0_i32 : i32
    %c0_i32_0 = arith.constant 0 : i32
    %c0_i32_1 = arith.constant 0 : i32
    return %2, %c0_i32_0 : i32, i32
  }
  func.func @transform_2(%arg0: i32, %arg1: i32) -> (i32, i32) {
    %c1_i32 = arith.constant 1 : i32
    %0 = arith.muli %arg0, %c1_i32 : i32
    %1 = arith.addi %0, %arg1 : i32
    %c0_i32 = arith.constant 0 : i32
    %2 = arith.minsi %1, %c0_i32 : i32
    %c0_i32_0 = arith.constant 0 : i32
    %c0_i32_1 = arith.constant 0 : i32
    return %2, %c0_i32_0 : i32, i32
  }
  func.func @transform_3(%arg0: i32, %arg1: i32) -> (i32, i32) {
    %c1_i32 = arith.constant 1 : i32
    %0 = arith.muli %arg0, %c1_i32 : i32
    %1 = arith.addi %0, %arg1 : i32
    %c0_i32 = arith.constant 0 : i32
    %2 = arith.minsi %1, %c0_i32 : i32
    %c0_i32_0 = arith.constant 0 : i32
    %c0_i32_1 = arith.constant 0 : i32
    return %2, %c0_i32_0 : i32, i32
  }
  func.func @transform_4(%arg0: i32, %arg1: i32) -> (i32, i32, i32) {
    %c0_i32 = arith.constant 0 : i32
    %c0_i32_0 = arith.constant 0 : i32
    %c0_i32_1 = arith.constant 0 : i32
    return %arg0, %c0_i32, %c0_i32_0 : i32, i32, i32
  }
  func.func @transform_5(%arg0: i32, %arg1: i32) -> (i32, i32, i32) {
    %c0_i32 = arith.constant 0 : i32
    %c0_i32_0 = arith.constant 0 : i32
    %c0_i32_1 = arith.constant 0 : i32
    return %arg0, %c0_i32, %c0_i32_0 : i32, i32, i32
  }
}

</mosaic_0001>

<bundles_post_ra>
// kernel: rate_distortion_loss.1
= control target key start
LH: loop header
LB: loop body
LE: loop exit
PB: predicated region body
PF: predicated region fallthrough
CT: control target
= control target key end

     0   :  { %s689_s18 = smov 0   ;;  %s691_s19 = smov 0   ;;  %s744_s0 = inlined_call_operand.vmem [shape: f32[16,128], index: 0, kind: input, shape index: {}]   ;;  %s745_s1 = inlined_call_operand.vmem [shape: f32[16,128], index: 1, kind: input, shape index: {}]   ;;  %s746_s2 = inlined_call_operand.vmem [shape: f32[8,128], index: 2, kind: input, shape index: {}]   ;;  %s747_s3 = inlined_call_operand.vmem [shape: f32[8,128], index: 3, kind: input, shape index: {}]   ;;  %s748_s4 = inlined_call_operand.vmem [shape: f32[2,1,1], index: 4, kind: output, shape index: {0}]   ;;  %s749_s5 = inlined_call_operand.vmem [shape: f32[2,1,1], index: 5, kind: output, shape index: {1}]  }
   0x1   :  { %s693_s20 = smov 0  }
   0x2 LB: > { %s28_s21 = sadd.s32 1, %s653_s19  ;;  %p586_p0 = scmp.ge.s32.totalorder %s657_s20, 1  ;;  %s657_s20 = sphi %s693_s20, %s16_s20   ;;  %s653_s19 = sphi %s691_s19, %s751_s19   ;;  %s649_s18 = sphi %s689_s18, %s750_s18  }
   0x3   : > { %p30_p1 = scmp.ge.s32.totalorder %s28_s21, 2  ;;  %p280_p2 = scmp.lt.s32.totalorder %s657_s20, 3 }
   0x5   : > { %s753_s21 = smov (%p30_p1, %s28_s21), 0  ;;  %p281_p3 = pnand %p586_p0, %p280_p2 }
   0x6   : > { %p335_p4 = scmp.lt.s32.totalorder (!%p281_p3), %s649_s18, 0  ;;  %v400_v0 = vlaneseq (!%p281_p3)  ;;  %s599_s22 = sshll.u32 (!%p281_p3), %s649_s18, 4  ;;  %vm452_vm3 = vcmask (!%p281_p3), 0  }
   0x7   : > { %284 = sbr.rel (%p281_p3) target bundleno = 243 (0xf3), region = 36  ;;  %s600_s23 = sshll.u32 (!%p281_p3), %s649_s18, 3  ;;  %v405_v4 = vstv (!%p281_p3), %s599_s22 }
   0x8   : > { %v401_v1 = vshrl.u32 (!%p281_p3), %v400_v0, 7  ;;  %v420_v2 = vstv (!%p281_p3), %s600_s23  ;;  %p378_p6 = scmp.lt.s32.totalorder (!%p281_p3), %s649_s18, 1 }
   0xa   : > { %v402_v3 = vadd.s32 (!%p281_p3), 8, %v401_v1  ;;  %v421_v5 = vadd.s32 (!%p281_p3), %v420_v2, %v401_v1  ;;  %v406_v6 = vadd.s32 (!%p281_p3), %v405_v4, %v401_v1 }
   0xc   : > { %v407_v7 = vadd.s32 (!%p281_p3), %v405_v4, %v402_v3  ;;  %vm422_vm0 = vcmp.lt.s32.totalorder (!%p281_p3), %v421_v5, 8  ;;  %vm408_vm1 = vcmp.lt.s32.totalorder (!%p281_p3), %v406_v6, 16 }
   0xe   : > { %s336_s24 = scalar_select %p335_p4, %s649_s18, 0  ;;  %vm409_vm2 = vcmp.lt.s32.totalorder %v407_v7, 16 }
   0xf   : > { %s759_s18 = smov (!%p378_p6, %s649_s18), 1 }
  0x10   : > { %s587_s25 = sshll.u32 %s336_s24, 1  ;;  %s755_s24 = smov (!%p335_p4, %s336_s24), 0 }
  0x11   : > { %p338_p5 = scmp.lt.s32.totalorder %s587_s25, 1  ;;  %s594_s26 = sshll.u32 %s755_s24, 3 }
  0x12   : > { %s364_s30 = scalar_lea.vmem %s746_s2, %s594_s26  ;;  %s374_s14 = scalar_lea.vmem %s747_s3, %s594_s26 }
  0x13   : > { %s757_s25 = smov (!%p338_p5, %s587_s25), 1  ;;  %v418_v8 = vld [vmem:[%s364_s30] sm:$0xff]  ;;  %s380_s17 = scalar_lea.vmem %s748_s4, %s759_s18 }
  0x14   : > { %s588_s27 = sshll.u32 %s757_s25, 3  ;;  %v423_v12 = vsel %vm422_vm0, %v418_v8, 1.0  ;;  %v430_v15 = vld [vmem:[%s374_s14] sm:$0xff]  ;;  %s383_s25 = scalar_lea.vmem %s749_s5, %s759_s18 }
  0x15   : > { %s341_s8 = scalar_lea.vmem %s744_s0, %s588_s27  ;;  %s353_s11 = scalar_lea.vmem %s745_s1, %s588_s27  ;;  %631 = vlog2.f32 %v423_v12  ;;  %v431_v17 = vsel %vm422_vm0, %v430_v15, 1.0 }
  0x16   : > { %v394_v9 = vld [vmem:[%s341_s8] sm:$0xff]  ;;  %v395_v10 = vld [vmem:[%s341_s8 + $0x8] sm:$0xff]  ;;  %633 = vlog2.f32 %v431_v17 }
  0x17   : > { %v396_v11 = vld [vmem:[%s353_s11] sm:$0xff]  ;;  %v397_v13 = vld [vmem:[%s353_s11 + $0x8] sm:$0xff] }
  0x18   : > { %v398_v14 = vsub.f32 %v394_v9, %v396_v11  ;;  %v399_v16 = vsub.f32 %v395_v10, %v397_v13 }
  0x1a   : > { %v410_v18 = vsel %vm408_vm1, %v398_v14, 0.0  ;;  %v411_v19 = vsel %vm409_vm2, %v399_v16, 0.0 }
  0x1b   : > { %v413_v20 = vmul.f32 %v410_v18, %v410_v18  ;;  %v414_v21 = vmul.f32 %v411_v19, %v411_v19 }
  0x1d   : > { %v415_v22 = vadd.f32 %v414_v21, %v413_v20 }
  0x1f   : > { %442 = vadd.xlane.f32.xlu0 %v415_v22  ;;  %v632_v23 = vpop.eup %631 }
  0x20   : > { %v426_v24 = vmul.f32 0.6931472, %v632_v23  ;;  %v634_v25 = vpop.eup %633 }
  0x21   : > { %v434_v26 = vmul.f32 0.6931472, %v634_v25 }
  0x23   : > { %v436_v27 = vadd.f32 %v434_v26, %v426_v24 }
  0x25   : > { %455 = vadd.xlane.f32.xlu0 %v436_v27 }
  0xac   : > { %v443_v28 = vpop.xlane.xlu0 %442 }
  0xad   : > { %v444_v29 = vrot.slane %v443_v28, 4 }
  0xaf   : > { %v445_v30 = vadd.f32 %v444_v29, %v443_v28 }
  0xb1   : > { %v446_v31 = vrot.slane %v445_v30, 2 }
  0xb2   : > { %v456_v33 = vpop.xlane.xlu0 %455 }
  0xb3   : > { %v447_v32 = vadd.f32 %v446_v31, %v445_v30  ;;  %v457_v35 = vrot.slane %v456_v33, 4 }
  0xb5   : > { %v448_v34 = vrot.slane %v447_v32, 1  ;;  %v458_v37 = vadd.f32 %v457_v35, %v456_v33 }
  0xb7   : > { %v449_v36 = vadd.f32 %v448_v34, %v447_v32  ;;  %v459_v38 = vrot.slane %v458_v37, 2 }
  0xb9   : > { %603 = vpush %v449_v36  ;;  %v460_v39 = vadd.f32 %v459_v38, %v458_v37 }
  0xbb   : > { %v461_v40 = vrot.slane %v460_v39, 1 }
  0xbd   : > { %v462_v41 = vadd.f32 %v461_v40, %v460_v39 }
  0xbf   : > { %605 = vpush %v462_v41 }
  0xea   : > { %s604_s22 = spop %603 }
  0xeb   : > { %v451_v42 = vstv %s604_s22 }
  0xec   : > { %453 = vst.msk [vmem:[%s380_s17] sm:$0x1] %vm452_vm3, %v451_v42 }
  0xf0   : > { %s606_s26 = spop %605 }
  0xf1   : > { %v464_v43 = vstv %s606_s26 }
  0xf2   : > { %465 = vst.msk [vmem:[%s383_s25] sm:$0x1] %vm452_vm3, %v464_v43 }
  0xf3 PF: > { %s16_s20 = sadd.s32 1, %s657_s20   ;;  %s750_s18 = smov %s653_s19 }
  0xf4   : > { %p13_p7 = scmp.ge.s32.totalorder %s16_s20, 4   ;;  %s751_s19 = smov %s753_s21 }
  0xf6   :  { %15 = sbr.rel (!%p13_p7) target bundleno = 2 (0x2), region = 99 }

</bundles_post_ra>
